<compile_context>
chip_gen: v7x
topology: tpu7x:2x2x1
jax: 0.10.0
libtpu: 0.0.40
codegen_flags: <defaults>
</compile_context>

<pallas_src>
import math
from functools import reduce
from itertools import pairwise

import jax
import jax.numpy as jnp
from jax.experimental import pallas as pl
from jax.experimental.pallas import tpu as pltpu

BN_EPS = 1e-5
LANE = 128


def _get_units(output_shape, latent_dim, num_layers):
    # mirrors Decoder._get_units exactly
    final_units = reduce(lambda a, b: a * b, output_shape)
    shrinkage = int(pow(final_units // latent_dim, 1 / num_layers))
    units = [final_units // shrinkage ** i for i in range(num_layers)]
    units.reverse()
    units = [latent_dim] + units
    return units


def _round_up(x, m):
    return (x + m - 1) // m * m


def _vmem_limit(bytes_needed):
    # 2x headroom, floor at v5e's 16 MiB scoped default, stay under v7x's
    # 64 MiB physical VMEM.
    return int(min(60 * 2 ** 20, max(16 * 2 ** 20, 2 * bytes_needed)))


# --------------------------------------------------------------------------
# Kernels
# --------------------------------------------------------------------------
def make_hidden_kernel(num_hidden):
    """refs: x, [w_bf16, gamma, beta] * num_hidden, h_out (bf16)."""

    def kernel(*refs):
        x_ref = refs[0]
        out_ref = refs[-1]
        h = x_ref[...].astype(jnp.bfloat16)  # single cast point for the MXU
        idx = 1
        for _ in range(num_hidden):
            w_ref, g_ref, b_ref = refs[idx], refs[idx + 1], refs[idx + 2]
            idx += 3
            # Linear (bias=False): bf16 inputs, f32 accumulation (MXU native).
            h = jnp.dot(h, w_ref[...], preferred_element_type=jnp.float32)
            # BatchNorm1d (training-mode batch stats, biased variance),
            # folded into one per-feature scale/shift FMA.
            mean = jnp.mean(h, axis=0, keepdims=True)
            mean_sq = jnp.mean(h * h, axis=0, keepdims=True)
            var = jnp.maximum(mean_sq - mean * mean, 0.0)
            scale = g_ref[...] * jax.lax.rsqrt(var + BN_EPS)
            shift = b_ref[...] - mean * scale
            # FMA + ReLU, then bf16 for the next matmul.
            h = jnp.maximum(h * scale + shift, 0.0).astype(jnp.bfloat16)
        out_ref[...] = h

    return kernel


def final_kernel(h_ref, w_ref, b_ref, o_ref):
    # One N-tile of the last Linear + Tanh.  h is resident; w/b/o tiles are
    # pipelined by the BlockSpec machinery.
    z = jnp.dot(h_ref[...], w_ref[...], preferred_element_type=jnp.float32)
    o_ref[...] = jnp.tanh(z + b_ref[...])


# --------------------------------------------------------------------------
# Params / wrapper
# --------------------------------------------------------------------------
def init_decoder_params(key, output_shape, latent_dim, num_layers):
    """Deterministic init mimicking nn.Linear default (uniform +-1/sqrt(fan_in)),
    BatchNorm gamma=1 / beta=0.  Weights stored as (in, out), f32."""
    units = _get_units(output_shape, latent_dim, num_layers)
    keys = jax.random.split(key, num_layers + 1)
    params = []
    ki = 0
    for in_u, out_u in pairwise(units[:-1]):
        bound = 1.0 / math.sqrt(in_u)
        w = jax.random.uniform(keys[ki], (in_u, out_u), jnp.float32, -bound, bound)
        ki += 1
        params += [w, jnp.ones((1, out_u), jnp.float32), jnp.zeros((1, out_u), jnp.float32)]
    in_u, out_u = units[-2], units[-1]
    bound = 1.0 / math.sqrt(in_u)
    w = jax.random.uniform(keys[ki], (in_u, out_u), jnp.float32, -bound, bound)
    b = jax.random.uniform(keys[ki + 1], (1, out_u), jnp.float32, -bound, bound)
    params += [w, b]
    return units, params


def decoder_forward(x, params, units, output_shape, *, tn=LANE):
    B = x.shape[0]
    num_hidden = len(units) - 2
    hidden_last = units[-2]
    final_units = units[-1]

    hidden_params = params[: 3 * num_hidden]
    w_last, b_last = params[-2], params[-1]

    # bf16 weights for the MXU; BN affine + bias stay f32.
    hp = []
    for i in range(num_hidden):
        w, g, b = hidden_params[3 * i: 3 * i + 3]
        hp += [w.astype(jnp.bfloat16), g, b]

    # ---- kernel 1: hidden stack, fully VMEM-resident, grid=() ----
    hidden_bytes = (x.size * 4
                    + sum(int(p.size) * p.dtype.itemsize for p in hp)
                    + B * hidden_last * 2)
    h_last = pl.pallas_call(
        make_hidden_kernel(num_hidden),
        out_shape=jax.ShapeDtypeStruct((B, hidden_last), jnp.bfloat16),
        in_specs=[pl.BlockSpec(memory_space=pltpu.MemorySpace.VMEM)] * (1 + len(hp)),
        out_specs=pl.BlockSpec(memory_space=pltpu.MemorySpace.VMEM),
        compiler_params=pltpu.CompilerParams(
            vmem_limit_bytes=_vmem_limit(hidden_bytes)),
    )(x, *hp)

    # ---- kernel 2: final Linear + Tanh, tiled over N (lane-padded) ----
    n_pad = _round_up(final_units, tn)
    w_p = jnp.zeros((hidden_last, n_pad), jnp.bfloat16)
    w_p = w_p.at[:, :final_units].set(w_last.astype(jnp.bfloat16))
    b_p = jnp.zeros((1, n_pad), jnp.float32).at[:, :final_units].set(b_last)
    nt = n_pad // tn

    final_bytes = (B * hidden_last * 2                       # resident activation
                   + 2 * (hidden_last * tn * 2               # double-buffered w tiles
                          + tn * 4 + B * tn * 4))            # bias + out tiles
    out = pl.pallas_call(
        final_kernel,
        out_shape=jax.ShapeDtypeStruct((B, n_pad), jnp.float32),
        grid=(nt,),
        in_specs=[
            pl.BlockSpec((B, hidden_last), lambda j: (0, 0)),   # resident across grid
            pl.BlockSpec((hidden_last, tn), lambda j: (0, j)),  # pipelined weight tiles
            pl.BlockSpec((1, tn), lambda j: (0, j)),
        ],
        out_specs=pl.BlockSpec((B, tn), lambda j: (0, j)),
        compiler_params=pltpu.CompilerParams(
            dimension_semantics=("parallel",),
            vmem_limit_bytes=_vmem_limit(final_bytes)),
    )(h_last, w_p, b_p)

    out = out[:, :final_units]
    # PyTorch: x.view(-1, *output_shape)
    return out.reshape(-1, *output_shape)


def _ref_forward(x, params, units, output_shape):
    # plain-JAX f32 reference (true module semantics) for sanity checking
    h = x
    num_hidden = len(units) - 2
    i = 0
    for _ in range(num_hidden):
        w, g, b = params[i], params[i + 1], params[i + 2]
        i += 3
        h = h @ w
        m = h.mean(0, keepdims=True)
        v = ((h - m) ** 2).mean(0, keepdims=True)
        h = (h - m) / jnp.sqrt(v + BN_EPS) * g + b
        h = jnp.maximum(h, 0.0)
    w, b = params[i], params[i + 1]
    return jnp.tanh(h @ w + b).reshape(-1, *output_shape)


if __name__ == "__main__":
    # Config consistent with the module:
    # output_shape=(1,16,16) -> final_units=256, latent_dim=32, num_layers=2
    # => units = [32, 128, 256].  batch=128 fills the MXU rows; all samples in
    # one call form one logical BatchNorm batch.
    output_shape = (1, 16, 16)
    latent_dim = 32
    num_layers = 2
    batch = 128

    key = jax.random.PRNGKey(0)
    kx, kp = jax.random.split(key)
    units, params = init_decoder_params(kp, output_shape, latent_dim, num_layers)
    x = jax.random.normal(kx, (batch, latent_dim), jnp.float32)

    y = decoder_forward(x, params, units, output_shape)
    y = jax.block_until_ready(y)

    ref = _ref_forward(x, params, units, output_shape)
    assert y.shape == (batch, *output_shape), y.shape
    err = float(jnp.abs(y - ref).max())
    assert jnp.allclose(y, ref, atol=2e-2, rtol=2e-2), err
    print("KERNEL_OK")
</pallas_src>

<mosaic_0001>
module attributes {stable_mosaic.version = 11 : i64} {
  func.func @kernel(%arg0: memref<128x32xf32, #tpu.memory_space<vmem>>, %arg1: memref<32x128xbf16, #tpu.memory_space<vmem>>, %arg2: memref<1x128xf32, #tpu.memory_space<vmem>>, %arg3: memref<1x128xf32, #tpu.memory_space<vmem>>, %arg4: memref<128x128xbf16, #tpu.memory_space<vmem>>) attributes {dimension_semantics = [], scalar_prefetch = 0 : i64, scratch_operands = 0 : i64, tpu.core_type = #tpu.core_type<tc>} {
    %c0 = arith.constant 0 : index
    %c0_0 = arith.constant 0 : index
    %0 = vector.load %arg0[%c0, %c0_0] : memref<128x32xf32, #tpu.memory_space<vmem>>, vector<128x32xf32>
    %1 = arith.truncf %0 : vector<128x32xf32> to vector<128x32xbf16>
    %c0_1 = arith.constant 0 : index
    %c0_2 = arith.constant 0 : index
    %2 = vector.load %arg1[%c0_1, %c0_2] : memref<32x128xbf16, #tpu.memory_space<vmem>>, vector<32x128xbf16>
    %cst = arith.constant dense<0.000000e+00> : vector<128x128xf32>
    %3 = tpu.matmul %1, %2, %cst {dimension_numbers = #tpu.dot_dimension_numbers<[1], [0], [0], [1], [0, 0, 1, 1], [], []>} : vector<128x32xbf16>, vector<32x128xbf16>, vector<128x128xf32> -> vector<128x128xf32>
    %cst_3 = arith.constant dense<0.000000e+00> : vector<128xf32>
    %4 = vector.multi_reduction <add>, %3, %cst_3 [0] : vector<128x128xf32> to vector<128xf32>
    %5 = vector.shape_cast %4 : vector<128xf32> to vector<1x128xf32>
    %cst_4 = arith.constant 1.280000e+02 : f32
    %6 = vector.broadcast %cst_4 : f32 to vector<1x128xf32>
    %7 = arith.divf %5, %6 : vector<1x128xf32>
    %8 = arith.mulf %3, %3 : vector<128x128xf32>
    %cst_5 = arith.constant dense<0.000000e+00> : vector<128xf32>
    %9 = vector.multi_reduction <add>, %8, %cst_5 [0] : vector<128x128xf32> to vector<128xf32>
    %10 = vector.shape_cast %9 : vector<128xf32> to vector<1x128xf32>
    %cst_6 = arith.constant 1.280000e+02 : f32
    %11 = vector.broadcast %cst_6 : f32 to vector<1x128xf32>
    %12 = arith.divf %10, %11 : vector<1x128xf32>
    %13 = arith.mulf %7, %7 : vector<1x128xf32>
    %14 = arith.subf %12, %13 : vector<1x128xf32>
    %cst_7 = arith.constant 0.000000e+00 : f32
    %15 = vector.broadcast %cst_7 : f32 to vector<1x128xf32>
    %16 = arith.maximumf %14, %15 : vector<1x128xf32>
    %c0_8 = arith.constant 0 : index
    %c0_9 = arith.constant 0 : index
    %17 = vector.load %arg2[%c0_8, %c0_9] : memref<1x128xf32, #tpu.memory_space<vmem>>, vector<1x128xf32>
    %cst_10 = arith.constant 9.99999974E-6 : f32
    %18 = vector.broadcast %cst_10 : f32 to vector<1x128xf32>
    %19 = arith.addf %16, %18 : vector<1x128xf32>
    %20 = math.rsqrt %19 : vector<1x128xf32>
    %21 = arith.mulf %17, %20 : vector<1x128xf32>
    %c0_11 = arith.constant 0 : index
    %c0_12 = arith.constant 0 : index
    %22 = vector.load %arg3[%c0_11, %c0_12] : memref<1x128xf32, #tpu.memory_space<vmem>>, vector<1x128xf32>
    %23 = arith.mulf %7, %21 : vector<1x128xf32>
    %24 = arith.subf %22, %23 : vector<1x128xf32>
    %25 = vector.broadcast %21 : vector<1x128xf32> to vector<128x128xf32>
    %26 = arith.mulf %3, %25 : vector<128x128xf32>
    %27 = vector.broadcast %24 : vector<1x128xf32> to vector<128x128xf32>
    %28 = arith.addf %26, %27 : vector<128x128xf32>
    %cst_13 = arith.constant 0.000000e+00 : f32
    %29 = vector.broadcast %cst_13 : f32 to vector<128x128xf32>
    %30 = arith.maximumf %28, %29 : vector<128x128xf32>
    %31 = arith.truncf %30 : vector<128x128xf32> to vector<128x128xbf16>
    %c0_14 = arith.constant 0 : index
    %c0_15 = arith.constant 0 : index
    %32 = vector.load %arg4[%c0_14, %c0_15] : memref<128x128xbf16, #tpu.memory_space<vmem>>, vector<128x128xbf16>
    tpu.vector_store %arg4[%c0_14, %c0_15], %31 {strides = array<i32>} : memref<128x128xbf16, #tpu.memory_space<vmem>>, vector<128x128xbf16>,
    return
  }
}

</mosaic_0001>

<bundles_post_ra>
// kernel: tpu_custom_call.1
= control target key start
LH: loop header
LB: loop body
LE: loop exit
PB: predicated region body
PF: predicated region fallthrough
CT: control target
= control target key end

     0   :  { %vm59_vm0 = vcmask 261120   ;;  %s766_s0 = inlined_call_operand.vmem [shape: f32[128,32], index: 0, kind: input, shape index: {}]   ;;  %s767_s1 = inlined_call_operand.vmem [shape: bf16[32,128], index: 1, kind: input, shape index: {}]   ;;  %s768_s2 = inlined_call_operand.vmem [shape: f32[1,128], index: 2, kind: input, shape index: {}]   ;;  %s769_s3 = inlined_call_operand.vmem [shape: f32[1,128], index: 3, kind: input, shape index: {}]   ;;  %s770_s4 = inlined_call_operand.hbm [shape: bf16[128,128], index: 4, kind: output, shape index: {}]  }
   0x1   :  { %v534_v0 = vld [vmem:[%s767_s1] sm:$0xff]   ;;  %v535_v1 = vld [vmem:[%s767_s1 + $0x8] sm:$0xff]   ;;  %v21_v5 = vld [vmem:[%s766_s0 + $0x10] sm:$0xff] }
   0x2   :  { %507 = vmatprep.subr.bf16.mxu0 %v534_v0  ;;  %v19_v2 = vld [vmem:[%s766_s0] sm:$0xff]  ;;  %v20_v3 = vld [vmem:[%s766_s0 + $0x8] sm:$0xff]  ;;  %527 = vmatprep.subr.bf16.mxu1 %v534_v0  ;;  %v22_v6 = vld [vmem:[%s766_s0 + $0x18] sm:$0xff] }
   0x3   :  { %508 = vmatpush3.bf16.msra.mxu0 %v534_v0  ;;  %v35_v4 = vpack.c.bf16 %v20_v3, %v19_v2  ;;  %529 = vmatpush3.bf16.msra.mxu1 %v534_v0  ;;  %v23_v7 = vld [vmem:[%s766_s0 + $0x20] sm:$0xff]  ;;  %v24_v8 = vld [vmem:[%s766_s0 + $0x28] sm:$0xff]  ;;  %v29_v11 = vld [vmem:[%s766_s0 + $0x50] sm:$0xff]  ;;  %v36_v13 = vpack.c.bf16 %v22_v6, %v21_v5 }
   0x4   :  { %509 = vmatprep.subr.bf16.mxu0 %v535_v1  ;;  %528 = vmatprep.subr.bf16.mxu1 %v535_v1  ;;  %v27_v9 = vld [vmem:[%s766_s0 + $0x40] sm:$0xff]  ;;  %v28_v10 = vld [vmem:[%s766_s0 + $0x48] sm:$0xff]  ;;  %v30_v12 = vld [vmem:[%s766_s0 + $0x58] sm:$0xff]  ;;  %v37_v18 = vpack.c.bf16 %v24_v8, %v23_v7 }
   0x5   :  { %511 = vmatprep.mubr.msk.bf16.mxu0 %vm59_vm0, %v35_v4  ;;  %v39_v14 = vpack.c.bf16 %v28_v10, %v27_v9  ;;  %v40_v15 = vpack.c.bf16 %v30_v12, %v29_v11  ;;  %v31_v16 = vld [vmem:[%s766_s0 + $0x60] sm:$0xff]  ;;  %v32_v17 = vld [vmem:[%s766_s0 + $0x68] sm:$0xff] }
   0x6   :  { %v41_v19 = vpack.c.bf16 %v32_v17, %v31_v16 }
   0x7   :  { %510 = vmatpush3.bf16.msra.mxu0 %v535_v1  ;;  %530 = vmatpush3.bf16.msra.mxu1 %v535_v1 }
   0x8   :  { %9 = vsyncpa [#allocation3], 0  ;;  %519 = vmatprep.mubr.msk.bf16.mxu1 %vm59_vm0, %v39_v14  ;;  %v25_v20 = vld [vmem:[%s766_s0 + $0x30] sm:$0xff]  ;;  %v26_v21 = vld [vmem:[%s766_s0 + $0x38] sm:$0xff] }
   0x9   :  { %v33_v22 = vld [vmem:[%s766_s0 + $0x70] sm:$0xff]  ;;  %v34_v23 = vld [vmem:[%s766_s0 + $0x78] sm:$0xff]  ;;  %v38_v24 = vpack.c.bf16 %v26_v21, %v25_v20 }
   0xa   :  { %512 = vmatmul.mubr.msk.bf16.vlgmr.msra.gmra.mrb[0].mxu0 %vm59_vm0, %v36_v13  ;;  %520 = vmatmul.mubr.msk.bf16.vlgmr.msra.gmra.mrb[0].mxu1 %vm59_vm0, %v40_v15  ;;  %v42_v25 = vpack.c.bf16 %v34_v23, %v33_v22 }
   0xb   :  { %515 = vmatprep.mubr.msk.bf16.mxu0 %vm59_vm0, %v37_v18  ;;  %523 = vmatprep.mubr.msk.bf16.mxu1 %vm59_vm0, %v41_v19 }
  0x12   :  { %516 = vmatmul.mubr.msk.bf16.gmra.mrb[4].mxu0 %vm59_vm0, %v38_v24  ;;  %524 = vmatmul.mubr.msk.bf16.gmra.mrb[4].mxu1 %vm59_vm0, %v42_v25 }
  0xdd   :  { %v652_v26 = vpop.f32.mrb[0].mxu0  ;;  %v654_v27 = vpop.f32.mrb[0].mxu1 }
  0xde   :  { %v656_v28 = vpop.f32.mrb[1].mxu0  ;;  %v658_v29 = vpop.f32.mrb[1].mxu1  ;;  %v206_v37 = vmul.f32 %v652_v26, %v652_v26  ;;  %v214_v5 = vmul.f32 %v654_v27, %v654_v27 }
  0xdf   :  { %v660_v30 = vpop.f32.mrb[2].mxu0  ;;  %v662_v31 = vpop.f32.mrb[2].mxu1  ;;  %v204_v34 = vmul.f32 %v656_v28, %v656_v28  ;;  %v212_v63 = vmul.f32 %v658_v29, %v658_v29 }
  0xe0   :  { %v664_v32 = vpop.f32.mrb[3].mxu0  ;;  %v666_v33 = vpop.f32.mrb[3].mxu1  ;;  %v207_v40 = vmul.f32 %v660_v30, %v660_v30  ;;  %v215_v8 = vmul.f32 %v662_v31, %v662_v31 }
  0xe1   :  { %v181_v35 = vadd.f32 %v664_v32, %v656_v28  ;;  %v205_v36 = vmul.f32 %v664_v32, %v664_v32  ;;  %v213_v4 = vmul.f32 %v666_v33, %v666_v33 }
  0xe3   :  { %v182_v38 = vadd.f32 %v652_v26, %v181_v35  ;;  %v220_v39 = vadd.f32 %v205_v36, %v204_v34 }
  0xe5   :  { %v221_v41 = vadd.f32 %v220_v39, %v206_v37  ;;  %v679_v42 = vpop.f32.mrb[4].mxu0  ;;  %v183_v43 = vadd.f32 %v660_v30, %v182_v38  ;;  %v682_v44 = vpop.f32.mrb[4].mxu1 }
  0xe6   :  { %v684_v45 = vpop.f32.mrb[5].mxu0  ;;  %v686_v46 = vpop.f32.mrb[5].mxu1  ;;  %v210_v57 = vmul.f32 %v679_v42, %v679_v42  ;;  %v218_v17 = vmul.f32 %v682_v44, %v682_v44 }
  0xe7   :  { %v184_v47 = vadd.f32 %v183_v43, %v684_v45  ;;  %v208_v48 = vmul.f32 %v684_v45, %v684_v45  ;;  %v222_v49 = vadd.f32 %v221_v41, %v207_v40  ;;  %v691_v50 = vpop.f32.mrb[6].mxu0  ;;  %v693_v51 = vpop.f32.mrb[6].mxu1  ;;  %v216_v11 = vmul.f32 %v686_v46, %v686_v46 }
  0xe8   :  { %v695_v52 = vpop.f32.mrb[7].mxu0  ;;  %v697_v53 = vpop.f32.mrb[7].mxu1  ;;  %v211_v60 = vmul.f32 %v691_v50, %v691_v50  ;;  %v219_v20 = vmul.f32 %v693_v51, %v693_v51 }
  0xe9   :  { %v223_v54 = vadd.f32 %v222_v49, %v208_v48  ;;  %v185_v55 = vadd.f32 %v184_v47, %v695_v52  ;;  %v209_v56 = vmul.f32 %v695_v52, %v695_v52  ;;  %v217_v16 = vmul.f32 %v697_v53, %v697_v53 }
  0xeb   :  { %v186_v58 = vadd.f32 %v679_v42, %v185_v55  ;;  %v224_v59 = vadd.f32 %v223_v54, %v209_v56 }
  0xed   :  { %v225_v61 = vadd.f32 %v224_v59, %v210_v57  ;;  %v187_v62 = vadd.f32 %v691_v50, %v186_v58  ;;  %v253_v58 = vlaneseq }
  0xef   :  { %v188_v0 = vadd.f32 %v187_v62, %v658_v29  ;;  %v226_v1 = vadd.f32 %v225_v61, %v211_v60  ;;  %v254_v59 = vshrl.u32 %v253_v58, 7  ;;  %v245_v60 = vld [vmem:[%s768_s2] sm:$0x1]  ;;  %s562_s2 = smov [#allocation2]  }
  0xf1   :  { %v227_v2 = vadd.f32 %v226_v1, %v212_v63  ;;  %v189_v3 = vadd.f32 %v188_v0, %v666_v33  ;;  %v255_v61 = vsub.s32 0, %v254_v59  ;;  %v249_v0 = vld [vmem:[%s769_s3] sm:$0x1]  ;;  %s397_s3 = sshll.u32 %s562_s2, 4  ;;  %s398_s3 = int_to_ptr.vmem [resolvable:$true] %s397_s3 }
  0xf2   :  { %s538_s1 = scalar_lea.vmem %s398_s3, 1024  ;;  %p543_p1 = scmp.lt.s32.totalorder %s398_s3, %s398_s3 }
  0xf3   :  { %v190_v6 = vadd.f32 %v654_v27, %v189_v3  ;;  %v228_v7 = vadd.f32 %v227_v2, %v213_v4  ;;  %p539_p0 = scmp.ne.s32.totalorder %s398_s3, %s538_s1  ;;  %p544_p2 = scmp.lt.s32.totalorder %s538_s1, %s538_s1 }
  0xf5   :  { %v229_v9 = vadd.f32 %v228_v7, %v214_v5  ;;  %v191_v10 = vadd.f32 %v662_v31, %v190_v6  ;;  %p545_p3 = por %p544_p2, %p543_p1 }
  0xf7   :  { %v192_v12 = vadd.f32 %v191_v10, %v686_v46  ;;  %v230_v13 = vadd.f32 %v229_v9, %v215_v8  ;;  %p546_p4 = pnand %p545_p3, %p539_p0 }
  0xf9   :  { %v231_v14 = vadd.f32 %v230_v13, %v216_v11  ;;  %v193_v15 = vadd.f32 %v192_v12, %v697_v53 }
  0xfb   :  { %v194_v18 = vadd.f32 %v682_v44, %v193_v15  ;;  %v232_v19 = vadd.f32 %v231_v14, %v217_v16 }
  0xfd   :  { %v195_v21 = vadd.f32 %v693_v51, %v194_v18  ;;  %v233_v22 = vadd.f32 %v232_v19, %v218_v17 }
  0xff   :  { %v196_v23 = vrot.slane %v195_v21, 4  ;;  %v234_v24 = vadd.f32 %v233_v22, %v219_v20 }
 0x101   :  { %v197_v25 = vadd.f32 %v196_v23, %v195_v21  ;;  %v235_v34 = vrot.slane %v234_v24, 4 }
 0x103   :  { %v198_v35 = vrot.slane %v197_v25, 2  ;;  %v236_v36 = vadd.f32 %v235_v34, %v234_v24 }
 0x105   :  { %v199_v37 = vadd.f32 %v198_v35, %v197_v25  ;;  %v237_v38 = vrot.slane %v236_v36, 2 }
 0x107   :  { %v200_v39 = vrot.slane %v199_v37, 1  ;;  %v238_v40 = vadd.f32 %v237_v38, %v236_v36 }
 0x109   :  { %v201_v41 = vadd.f32 %v200_v39, %v199_v37  ;;  %v239_v43 = vrot.slane %v238_v40, 1 }
 0x10b   :  { %v203_v47 = vmul.f32 0.0078125, %v201_v41  ;;  %v240_v48 = vadd.f32 %v239_v43, %v238_v40 }
 0x10d   :  { %v241_v49 = vmul.f32 0.0078125, %v240_v48  ;;  %v242_v54 = vmul.f32 %v203_v47, %v203_v47 }
 0x10f   :  { %v243_v55 = vsub.f32 %v241_v49, %v242_v54 }
 0x111   :  { %v244_v56 = vmax.f32 %v243_v55, 0.0 }
 0x113   :  { %v246_v57 = vadd.f32 1e-05, %v244_v56 }
 0x115   :  { %536 = vrsqrt.f32 %v246_v57 }
 0x11f   :  { %v537_v62 = vpop.eup %536 }
 0x120   :  { %v248_v63 = vmul.f32 %v537_v62, %v245_v60 }
 0x122   :  { %v250_v1 = vmul.f32 %v248_v63, %v203_v47  ;;  %v256_v2 = vrot.slane %v248_v63, %v255_v61 }
 0x124   :  { %v251_v3 = vsub.f32 %v249_v0, %v250_v1  ;;  %v270_v4 = vmul.f32 %v256_v2, %v686_v46  ;;  %v271_v5 = vmul.f32 %v256_v2, %v697_v53  ;;  %v258_v6 = vmul.f32 %v256_v2, %v656_v28 }
 0x125   :  { %v259_v7 = vmul.f32 %v256_v2, %v664_v32  ;;  %v260_v8 = vmul.f32 %v652_v26, %v256_v2  ;;  %v261_v9 = vmul.f32 %v660_v30, %v256_v2  ;;  %v262_v10 = vmul.f32 %v256_v2, %v684_v45 }
 0x126   :  { %v278_v11 = vrot.slane %v251_v3, %v255_v61  ;;  %v263_v12 = vmul.f32 %v256_v2, %v695_v52  ;;  %v264_v13 = vmul.f32 %v679_v42, %v256_v2  ;;  %v265_v14 = vmul.f32 %v691_v50, %v256_v2 }
 0x127   :  { %v266_v46 = vmul.f32 %v256_v2, %v658_v29  ;;  %v267_v53 = vmul.f32 %v256_v2, %v666_v33  ;;  %v268_v28 = vmul.f32 %v654_v27, %v256_v2  ;;  %v269_v32 = vmul.f32 %v662_v31, %v256_v2 }
 0x128   :  { %v292_v26 = vadd.f32 %v278_v11, %v270_v4  ;;  %v293_v15 = vadd.f32 %v278_v11, %v271_v5  ;;  %v272_v30 = vmul.f32 %v682_v44, %v256_v2  ;;  %v273_v45 = vmul.f32 %v693_v51, %v256_v2 }
 0x129   :  { %v280_v16 = vadd.f32 %v278_v11, %v258_v6  ;;  %v281_v52 = vadd.f32 %v278_v11, %v259_v7  ;;  %v282_v17 = vadd.f32 %v278_v11, %v260_v8  ;;  %v283_v42 = vadd.f32 %v278_v11, %v261_v9 }
 0x12a   :  { %v308_v18 = vmax.f32 %v292_v26, 0.0  ;;  %v309_v50 = vmax.f32 %v293_v15, 0.0  ;;  %v284_v19 = vadd.f32 %v278_v11, %v262_v10  ;;  %v285_v29 = vadd.f32 %v278_v11, %v263_v12 }
 0x12b   :  { %v286_v20 = vadd.f32 %v278_v11, %v264_v13  ;;  %v287_v33 = vadd.f32 %v278_v11, %v265_v14  ;;  %v288_v21 = vadd.f32 %v278_v11, %v266_v46  ;;  %v289_v27 = vadd.f32 %v278_v11, %v267_v53 }
 0x12c   :  { %v483_v22 = vpack.c.bf16 %v309_v50, %v308_v18  ;;  %v290_v31 = vadd.f32 %v278_v11, %v268_v28  ;;  %v291_v23 = vadd.f32 %v278_v11, %v269_v32  ;;  %v294_v24 = vadd.f32 %v278_v11, %v272_v30 }
 0x12d   :  { %v295_v25 = vadd.f32 %v278_v11, %v273_v45  ;;  %v296_v44 = vmax.f32 %v280_v16, 0.0  ;;  %v297_v34 = vmax.f32 %v281_v52, 0.0  ;;  %v298_v51 = vmax.f32 %v282_v17, 0.0 }
 0x12e   :  { %495 = vst [vmem:[#allocation2 + $0x30] sm:$0xff] %v483_v22   ;;  %v299_v35 = vmax.f32 %v283_v42, 0.0  ;;  %v300_v36 = vmax.f32 %v284_v19, 0.0  ;;  %v301_v37 = vmax.f32 %v285_v29, 0.0  ;;  %v302_v38 = vmax.f32 %v286_v20, 0.0 }
 0x12f   :  { %v303_v39 = vmax.f32 %v287_v33, 0.0  ;;  %v304_v40 = vmax.f32 %v288_v21, 0.0  ;;  %v305_v41 = vmax.f32 %v289_v27, 0.0  ;;  %v306_v43 = vmax.f32 %v290_v31, 0.0 }
 0x130   :  { %v307_v47 = vmax.f32 %v291_v23, 0.0  ;;  %v310_v48 = vmax.f32 %v294_v24, 0.0  ;;  %v311_v49 = vmax.f32 %v295_v25, 0.0  ;;  %v453_v54 = vpack.c.bf16 %v297_v34, %v296_v44 }
 0x131   :  { %v458_v55 = vpack.c.bf16 %v299_v35, %v298_v51  ;;  %v463_v56 = vpack.c.bf16 %v301_v37, %v300_v36  ;;  %v468_v57 = vpack.c.bf16 %v303_v39, %v302_v38  ;;  %v473_v58 = vpack.c.bf16 %v305_v41, %v304_v40 }
 0x132   :  { %454 = vst [vmem:[#allocation2] sm:$0xff] %v453_v54   ;;  %v478_v59 = vpack.c.bf16 %v307_v47, %v306_v43  ;;  %v488_v60 = vpack.c.bf16 %v311_v49, %v310_v48 }
 0x133   :  { %490 = vst [vmem:[#allocation2 + $0x8] sm:$0xff] %v458_v55   ;;  %491 = vst [vmem:[#allocation2 + $0x10] sm:$0xff] %v463_v56  }
 0x134   :  { %492 = vst [vmem:[#allocation2 + $0x18] sm:$0xff] %v468_v57   ;;  %493 = vst [vmem:[#allocation2 + $0x20] sm:$0xff] %v473_v58  }
 0x135   :  { %494 = vst [vmem:[#allocation2 + $0x28] sm:$0xff] %v478_v59   ;;  %496 = vst [vmem:[#allocation2 + $0x38] sm:$0xff] %v488_v60  }
 0x136   :  { %549 = shalt.err (!%p546_p4)
}
 0x137   :  { %s550_s29 = scalar_lea.hbm %s770_s4, 1024 }
 0x138   :  { %p551_p5 = scmp.ne.s32.totalorder %s770_s4, %s550_s29  ;;  %p554_p6 = scmp.lt.u32.totalorder %s550_s29, %s770_s4 }
 0x13a   :  { %p556_p7 = pnand %p554_p6, %p551_p5 }
 0x13c   :  { %559 = shalt.err (!%p556_p7)
}
 0x13d   :  { %s563_s8 = smov 64   ;;  %s564_s9 = smov 4  }
 0x13e   :  { %403 = dma.vmem_to_hbm [thread:$0]  %s398_s3, 1024, %s770_s4, [#allocation3], %s563_s8, %s563_s8, %s564_s9  }
 0x13f   :  { %560 = dma.done.wait [#allocation3], 1024  }
 0x140   :  { %561 = vsyncadd [#allocation3], 4294966272 }
 0x141   :  { %407 = vsyncpa [#allocation3], 1 }

</bundles_post_ra>
